<compile_context>
chip_gen: v5e
topology: v5e:2x2
jax: 0.10.0
libtpu: 0.0.40
codegen_flags: <defaults>
</compile_context>

<pallas_src>
import functools

import jax
import jax.numpy as jnp
from jax import lax
from jax.experimental import pallas as pl
from jax.experimental.pallas import tpu as pltpu

M_TO_MM = 1000.0          # cfg.conversions.m_to_mm
CGW_CONST = 0.01          # cfg.synthetic.Cgw
SATDK_CONST = 0.1         # cfg.synthetic.satdk

# simplified-CFE constants
_SMAX_SOIL = 0.5
_EXPON = 1.0              # == 1.0 and _SMAX_GW == 1.0 -> gw flux uses exp(S) - 1
_DT = 1.0
_GW_INIT = 0.05

_LANES = 128              # basins per lane block
_CHUNK = 8                # timesteps per inner chunk (one (8,128) store each)


def _cfe_kernel(cgw_ref, satdk_ref, f_ref, runoff_ref, s_soil_ref, s_gw_ref):
    # cgw_ref / satdk_ref : (1, 128)      per-basin parameters (lane block)
    # f_ref               : (2, T_TILE, 128)  [precip; pet] time window, m/h
    # runoff_ref          : (T_TILE, 128)     runoff in mm/h
    # s_soil_ref/s_gw_ref : (1, 128) VMEM scratch, carries state across time blocks
    t_blk = pl.program_id(1)

    @pl.when(t_blk == 0)
    def _():
        s_soil_ref[...] = jnp.zeros(s_soil_ref.shape, jnp.float32)
        s_gw_ref[...] = jnp.full(s_gw_ref.shape, _GW_INIT, jnp.float32)

    cgw = cgw_ref[...]        # (1, 128)
    satdk = satdk_ref[...]    # (1, 128)
    # hoisted out of the serial time loop (EUP reciprocal, computed once)
    inv_k = pl.reciprocal(satdk * _DT + 1e-8, approx=True)
    satdk_dt = satdk * _DT

    t_tile = runoff_ref.shape[0]
    n_chunks = t_tile // _CHUNK

    def chunk_body(c, carry):
        s_soil, s_gw = carry                              # each (1, 128)
        t0 = pl.multiple_of(c * _CHUNK, _CHUNK)
        p_chunk = f_ref[0, pl.ds(t0, _CHUNK), :]          # (8, 128) precip
        e_chunk = f_ref[1, pl.ds(t0, _CHUNK), :]          # (8, 128) PET

        out_rows = []
        for i in range(_CHUNK):                           # static unroll of 8 steps
            p = p_chunk[i:i + 1, :]
            e = e_chunk[i:i + 1, :]

            # evaporate from rainfall first
            et_from_p = jnp.minimum(p, e)
            water_in = p - et_from_p

            # Schaake-style partitioning: more surface runoff as soil saturates
            deficit = jnp.maximum(_SMAX_SOIL - s_soil, 0.0)
            infil_frac = 1.0 - jnp.exp(-deficit * inv_k)
            infiltration = water_in * infil_frac
            surface_runoff = water_in - infiltration
            s_soil = s_soil + infiltration

            # percolation from soil reservoir to groundwater (linear, rate satdk)
            perc = jnp.minimum(satdk_dt * s_soil, s_soil)  # s_soil >= 0 by construction
            s_soil = s_soil - perc
            s_gw = s_gw + perc

            # nonlinear groundwater reservoir outflow: Cgw * (exp(S) - 1)
            gw_flux = jnp.minimum(cgw * (jnp.exp(s_gw) - 1.0), s_gw)
            s_gw = s_gw - gw_flux

            out_rows.append((surface_runoff + gw_flux) * M_TO_MM)

        # one unmasked, 8-sublane-aligned store per chunk
        runoff_ref[pl.ds(t0, _CHUNK), :] = jnp.concatenate(out_rows, axis=0)
        return (s_soil, s_gw)

    init = (s_soil_ref[...], s_gw_ref[...])
    s_soil, s_gw = lax.fori_loop(0, n_chunks, chunk_body, init)
    s_soil_ref[...] = s_soil
    s_gw_ref[...] = s_gw


def _round_up(n, m):
    return ((n + m - 1) // m) * m


@functools.partial(jax.jit, static_argnames=("t_tile_target",))
def synthetic_cfe_forward(x, cgw, satdk, *, t_tile_target=512):
    """x: [num_basins, T, 2] (precip, pet in m/h) -> runoff [num_basins, T] in mm/h."""
    x = x.astype(jnp.float32)
    B, T, _ = x.shape

    Bp = _round_up(B, _LANES)
    t_tile = min(_round_up(T, _CHUNK), t_tile_target)
    Tp = _round_up(T, t_tile)

    # single layout change: [B, T, 2] -> [2, T, B], then pad time & lanes
    forcings = jnp.transpose(x, (2, 1, 0))                             # (2, T, B)
    forcings = jnp.pad(forcings, ((0, 0), (0, Tp - T), (0, Bp - B)))   # zeros: inert

    # nonzero parameter padding avoids 0 * inf = NaN in padded lanes
    cgw_p = jnp.pad(cgw.astype(jnp.float32).reshape(1, B),
                    ((0, 0), (0, Bp - B)), constant_values=1.0)
    satdk_p = jnp.pad(satdk.astype(jnp.float32).reshape(1, B),
                      ((0, 0), (0, Bp - B)), constant_values=1.0)

    grid = (Bp // _LANES, Tp // t_tile)   # (basin blocks [parallel], time blocks [arbitrary])

    runoff_tb = pl.pallas_call(
        _cfe_kernel,
        out_shape=jax.ShapeDtypeStruct((Tp, Bp), jnp.float32),
        grid_spec=pltpu.PrefetchScalarGridSpec(
            num_scalar_prefetch=0,
            grid=grid,
            in_specs=[
                pl.BlockSpec((1, _LANES), lambda j, t: (0, j)),
                pl.BlockSpec((1, _LANES), lambda j, t: (0, j)),
                pl.BlockSpec((2, t_tile, _LANES), lambda j, t: (0, t, j)),
            ],
            out_specs=pl.BlockSpec((t_tile, _LANES), lambda j, t: (t, j)),
            scratch_shapes=[
                pltpu.VMEM((1, _LANES), jnp.float32),   # s_soil
                pltpu.VMEM((1, _LANES), jnp.float32),   # s_gw
            ],
        ),
        compiler_params=pltpu.CompilerParams(
            dimension_semantics=("parallel", "arbitrary"),
            vmem_limit_bytes=32 * 1024 * 1024,
        ),
    )(cgw_p, satdk_p, forcings)

    return jnp.transpose(runoff_tb[:T, :B], (1, 0))                    # (B, T)


if __name__ == "__main__":
    num_basins = 8
    num_timesteps = 16

    # deterministic "cfg.synthetic" parameters (shapes from __init__)
    cgw = CGW_CONST * jnp.ones((num_basins,), jnp.float32)
    satdk = SATDK_CONST * jnp.ones((num_basins,), jnp.float32)

    # deterministic forcings: precip & PET in m/h (small positive values)
    key = jax.random.PRNGKey(0)
    kp, ke = jax.random.split(key)
    precip = jax.random.uniform(kp, (num_basins, num_timesteps), jnp.float32) * 0.01
    pet = jax.random.uniform(ke, (num_basins, num_timesteps), jnp.float32) * 0.002
    x = jnp.stack([precip, pet], axis=-1)           # [B, T, 2], like the torch module

    runoff = synthetic_cfe_forward(x, cgw, satdk)
    jax.block_until_ready(runoff)

    assert runoff.shape == (num_basins, num_timesteps)
    assert bool(jnp.all(jnp.isfinite(runoff)))
    assert bool(jnp.all(runoff >= 0.0))
    print("KERNEL_OK")
</pallas_src>

<mosaic_0001>
module attributes {stable_mosaic.version = 11 : i64} {
  func.func @_cfe_kernel(%arg0: i32, %arg1: i32, %arg2: memref<1x128xf32, #tpu.memory_space<vmem>>, %arg3: memref<1x128xf32, #tpu.memory_space<vmem>>, %arg4: memref<2x16x128xf32, #tpu.memory_space<vmem>>, %arg5: memref<16x128xf32, #tpu.memory_space<vmem>>, %arg6: memref<1x128xf32, #tpu.memory_space<vmem>>, %arg7: memref<1x128xf32, #tpu.memory_space<vmem>>) attributes {dimension_semantics = [#tpu.dimension_semantics<parallel>, #tpu.dimension_semantics<arbitrary>], iteration_bounds = array<i64: 1, 1>, scalar_prefetch = 0 : i64, scratch_operands = 2 : i64, tpu.core_type = #tpu.core_type<tc>, window_params = [{transform_indices = @transform_0, window_bounds = array<i64: 1, 128>}, {transform_indices = @transform_1, window_bounds = array<i64: 1, 128>}, {transform_indices = @transform_2, window_bounds = array<i64: 2, 16, 128>}, {transform_indices = @transform_3, window_bounds = array<i64: 16, 128>}]} {
    %c0_i32 = arith.constant 0 : i32
    %0 = arith.cmpi eq, %arg1, %c0_i32 : i32
    %1 = arith.extui %0 : i1 to i32
    %c0_i32_0 = arith.constant 0 : i32
    %2 = arith.cmpi ne, %1, %c0_i32_0 : i32
    scf.if %2 {
      %cst_16 = arith.constant 0.000000e+00 : f32
      %18 = vector.broadcast %cst_16 : f32 to vector<1x128xf32>
      %c0_17 = arith.constant 0 : index
      %c0_18 = arith.constant 0 : index
      %19 = vector.load %arg6[%c0_17, %c0_18] : memref<1x128xf32, #tpu.memory_space<vmem>>, vector<1x128xf32>
      tpu.vector_store %arg6[%c0_17, %c0_18], %18 {strides = array<i32>} : memref<1x128xf32, #tpu.memory_space<vmem>>, vector<1x128xf32>,
      %cst_19 = arith.constant 5.000000e-02 : f32
      %20 = vector.broadcast %cst_19 : f32 to vector<1x128xf32>
      %c0_20 = arith.constant 0 : index
      %c0_21 = arith.constant 0 : index
      %21 = vector.load %arg7[%c0_20, %c0_21] : memref<1x128xf32, #tpu.memory_space<vmem>>, vector<1x128xf32>
      tpu.vector_store %arg7[%c0_20, %c0_21], %20 {strides = array<i32>} : memref<1x128xf32, #tpu.memory_space<vmem>>, vector<1x128xf32>,
    } else {
    }
    %c0 = arith.constant 0 : index
    %c0_1 = arith.constant 0 : index
    %3 = vector.load %arg2[%c0, %c0_1] : memref<1x128xf32, #tpu.memory_space<vmem>>, vector<1x128xf32>
    %c0_2 = arith.constant 0 : index
    %c0_3 = arith.constant 0 : index
    %4 = vector.load %arg3[%c0_2, %c0_3] : memref<1x128xf32, #tpu.memory_space<vmem>>, vector<1x128xf32>
    %cst = arith.constant 1.000000e+00 : f32
    %5 = vector.broadcast %cst : f32 to vector<1x128xf32>
    %6 = arith.mulf %4, %5 : vector<1x128xf32>
    %cst_4 = arith.constant 9.99999993E-9 : f32
    %7 = vector.broadcast %cst_4 : f32 to vector<1x128xf32>
    %8 = arith.addf %6, %7 : vector<1x128xf32>
    %9 = tpu.reciprocal %8 {approx = true} : vector<1x128xf32> -> vector<1x128xf32>
    %cst_5 = arith.constant 1.000000e+00 : f32
    %10 = vector.broadcast %cst_5 : f32 to vector<1x128xf32>
    %11 = arith.mulf %4, %10 : vector<1x128xf32>
    %c0_6 = arith.constant 0 : index
    %c0_7 = arith.constant 0 : index
    %12 = vector.load %arg6[%c0_6, %c0_7] : memref<1x128xf32, #tpu.memory_space<vmem>>, vector<1x128xf32>
    %c0_8 = arith.constant 0 : index
    %c0_9 = arith.constant 0 : index
    %13 = vector.load %arg7[%c0_8, %c0_9] : memref<1x128xf32, #tpu.memory_space<vmem>>, vector<1x128xf32>
    %c0_i32_10 = arith.constant 0 : i32
    %c2_i32 = arith.constant 2 : i32
    %14 = arith.addi %c0_i32_10, %c2_i32 : i32
    %c1_i32 = arith.constant 1 : i32
    %15:2 = scf.for %arg8 = %c0_i32_10 to %14 step %c1_i32 iter_args(%arg9 = %12, %arg10 = %13) -> (vector<1x128xf32>, vector<1x128xf32>)  : i32 {
      %c8_i32 = arith.constant 8 : i32
      %18 = arith.muli %arg8, %c8_i32 : i32
      %19 = tpu.assume_multiple %18, 8 : i32
      %c0_16 = arith.constant 0 : index
      %20 = arith.index_cast %19 : i32 to index
      %c0_17 = arith.constant 0 : index
      %21 = vector.load %arg4[%c0_16, %20, %c0_17] : memref<2x16x128xf32, #tpu.memory_space<vmem>>, vector<1x8x128xf32>
      %22 = vector.shape_cast %21 : vector<1x8x128xf32> to vector<8x128xf32>
      %c1 = arith.constant 1 : index
      %23 = arith.index_cast %19 : i32 to index
      %c0_18 = arith.constant 0 : index
      %24 = vector.load %arg4[%c1, %23, %c0_18] : memref<2x16x128xf32, #tpu.memory_space<vmem>>, vector<1x8x128xf32>
      %25 = vector.shape_cast %24 : vector<1x8x128xf32> to vector<8x128xf32>
      %26 = vector.extract_strided_slice %22 {offsets = [0, 0], sizes = [1, 128], strides = [1, 1]} : vector<8x128xf32> to vector<1x128xf32>
      %27 = vector.extract_strided_slice %25 {offsets = [0, 0], sizes = [1, 128], strides = [1, 1]} : vector<8x128xf32> to vector<1x128xf32>
      %28 = arith.minimumf %26, %27 : vector<1x128xf32>
      %29 = arith.subf %26, %28 : vector<1x128xf32>
      %cst_19 = arith.constant 5.000000e-01 : f32
      %30 = vector.broadcast %cst_19 : f32 to vector<1x128xf32>
      %31 = arith.subf %30, %arg9 : vector<1x128xf32>
      %cst_20 = arith.constant 0.000000e+00 : f32
      %32 = vector.broadcast %cst_20 : f32 to vector<1x128xf32>
      %33 = arith.maximumf %31, %32 : vector<1x128xf32>
      %cst_21 = arith.constant 0.000000e+00 : f32
      %34 = vector.broadcast %cst_21 : f32 to vector<1x128xf32>
      %35 = arith.subf %34, %33 : vector<1x128xf32>
      %36 = arith.mulf %35, %9 : vector<1x128xf32>
      %37 = math.exp %36 : vector<1x128xf32>
      %cst_22 = arith.constant 1.000000e+00 : f32
      %38 = vector.broadcast %cst_22 : f32 to vector<1x128xf32>
      %39 = arith.subf %38, %37 : vector<1x128xf32>
      %40 = arith.mulf %29, %39 : vector<1x128xf32>
      %41 = arith.subf %29, %40 : vector<1x128xf32>
      %42 = arith.addf %arg9, %40 : vector<1x128xf32>
      %43 = arith.mulf %11, %42 : vector<1x128xf32>
      %44 = arith.minimumf %43, %42 : vector<1x128xf32>
      %45 = arith.subf %42, %44 : vector<1x128xf32>
      %46 = arith.addf %arg10, %44 : vector<1x128xf32>
      %47 = math.exp %46 : vector<1x128xf32>
      %cst_23 = arith.constant 1.000000e+00 : f32
      %48 = vector.broadcast %cst_23 : f32 to vector<1x128xf32>
      %49 = arith.subf %47, %48 : vector<1x128xf32>
      %50 = arith.mulf %3, %49 : vector<1x128xf32>
      %51 = arith.minimumf %50, %46 : vector<1x128xf32>
      %52 = arith.subf %46, %51 : vector<1x128xf32>
      %53 = arith.addf %41, %51 : vector<1x128xf32>
      %cst_24 = arith.constant 1.000000e+03 : f32
      %54 = vector.broadcast %cst_24 : f32 to vector<1x128xf32>
      %55 = arith.mulf %53, %54 : vector<1x128xf32>
      %56 = vector.extract_strided_slice %22 {offsets = [1, 0], sizes = [1, 128], strides = [1, 1]} : vector<8x128xf32> to vector<1x128xf32>
      %57 = vector.extract_strided_slice %25 {offsets = [1, 0], sizes = [1, 128], strides = [1, 1]} : vector<8x128xf32> to vector<1x128xf32>
      %58 = arith.minimumf %56, %57 : vector<1x128xf32>
      %59 = arith.subf %56, %58 : vector<1x128xf32>
      %cst_25 = arith.constant 5.000000e-01 : f32
      %60 = vector.broadcast %cst_25 : f32 to vector<1x128xf32>
      %61 = arith.subf %60, %45 : vector<1x128xf32>
      %cst_26 = arith.constant 0.000000e+00 : f32
      %62 = vector.broadcast %cst_26 : f32 to vector<1x128xf32>
      %63 = arith.maximumf %61, %62 : vector<1x128xf32>
      %cst_27 = arith.constant 0.000000e+00 : f32
      %64 = vector.broadcast %cst_27 : f32 to vector<1x128xf32>
      %65 = arith.subf %64, %63 : vector<1x128xf32>
      %66 = arith.mulf %65, %9 : vector<1x128xf32>
      %67 = math.exp %66 : vector<1x128xf32>
      %cst_28 = arith.constant 1.000000e+00 : f32
      %68 = vector.broadcast %cst_28 : f32 to vector<1x128xf32>
      %69 = arith.subf %68, %67 : vector<1x128xf32>
      %70 = arith.mulf %59, %69 : vector<1x128xf32>
      %71 = arith.subf %59, %70 : vector<1x128xf32>
      %72 = arith.addf %45, %70 : vector<1x128xf32>
      %73 = arith.mulf %11, %72 : vector<1x128xf32>
      %74 = arith.minimumf %73, %72 : vector<1x128xf32>
      %75 = arith.subf %72, %74 : vector<1x128xf32>
      %76 = arith.addf %52, %74 : vector<1x128xf32>
      %77 = math.exp %76 : vector<1x128xf32>
      %cst_29 = arith.constant 1.000000e+00 : f32
      %78 = vector.broadcast %cst_29 : f32 to vector<1x128xf32>
      %79 = arith.subf %77, %78 : vector<1x128xf32>
      %80 = arith.mulf %3, %79 : vector<1x128xf32>
      %81 = arith.minimumf %80, %76 : vector<1x128xf32>
      %82 = arith.subf %76, %81 : vector<1x128xf32>
      %83 = arith.addf %71, %81 : vector<1x128xf32>
      %cst_30 = arith.constant 1.000000e+03 : f32
      %84 = vector.broadcast %cst_30 : f32 to vector<1x128xf32>
      %85 = arith.mulf %83, %84 : vector<1x128xf32>
      %86 = vector.extract_strided_slice %22 {offsets = [2, 0], sizes = [1, 128], strides = [1, 1]} : vector<8x128xf32> to vector<1x128xf32>
      %87 = vector.extract_strided_slice %25 {offsets = [2, 0], sizes = [1, 128], strides = [1, 1]} : vector<8x128xf32> to vector<1x128xf32>
      %88 = arith.minimumf %86, %87 : vector<1x128xf32>
      %89 = arith.subf %86, %88 : vector<1x128xf32>
      %cst_31 = arith.constant 5.000000e-01 : f32
      %90 = vector.broadcast %cst_31 : f32 to vector<1x128xf32>
      %91 = arith.subf %90, %75 : vector<1x128xf32>
      %cst_32 = arith.constant 0.000000e+00 : f32
      %92 = vector.broadcast %cst_32 : f32 to vector<1x128xf32>
      %93 = arith.maximumf %91, %92 : vector<1x128xf32>
      %cst_33 = arith.constant 0.000000e+00 : f32
      %94 = vector.broadcast %cst_33 : f32 to vector<1x128xf32>
      %95 = arith.subf %94, %93 : vector<1x128xf32>
      %96 = arith.mulf %95, %9 : vector<1x128xf32>
      %97 = math.exp %96 : vector<1x128xf32>
      %cst_34 = arith.constant 1.000000e+00 : f32
      %98 = vector.broadcast %cst_34 : f32 to vector<1x128xf32>
      %99 = arith.subf %98, %97 : vector<1x128xf32>
      %100 = arith.mulf %89, %99 : vector<1x128xf32>
      %101 = arith.subf %89, %100 : vector<1x128xf32>
      %102 = arith.addf %75, %100 : vector<1x128xf32>
      %103 = arith.mulf %11, %102 : vector<1x128xf32>
      %104 = arith.minimumf %103, %102 : vector<1x128xf32>
      %105 = arith.subf %102, %104 : vector<1x128xf32>
      %106 = arith.addf %82, %104 : vector<1x128xf32>
      %107 = math.exp %106 : vector<1x128xf32>
      %cst_35 = arith.constant 1.000000e+00 : f32
      %108 = vector.broadcast %cst_35 : f32 to vector<1x128xf32>
      %109 = arith.subf %107, %108 : vector<1x128xf32>
      %110 = arith.mulf %3, %109 : vector<1x128xf32>
      %111 = arith.minimumf %110, %106 : vector<1x128xf32>
      %112 = arith.subf %106, %111 : vector<1x128xf32>
      %113 = arith.addf %101, %111 : vector<1x128xf32>
      %cst_36 = arith.constant 1.000000e+03 : f32
      %114 = vector.broadcast %cst_36 : f32 to vector<1x128xf32>
      %115 = arith.mulf %113, %114 : vector<1x128xf32>
      %116 = vector.extract_strided_slice %22 {offsets = [3, 0], sizes = [1, 128], strides = [1, 1]} : vector<8x128xf32> to vector<1x128xf32>
      %117 = vector.extract_strided_slice %25 {offsets = [3, 0], sizes = [1, 128], strides = [1, 1]} : vector<8x128xf32> to vector<1x128xf32>
      %118 = arith.minimumf %116, %117 : vector<1x128xf32>
      %119 = arith.subf %116, %118 : vector<1x128xf32>
      %cst_37 = arith.constant 5.000000e-01 : f32
      %120 = vector.broadcast %cst_37 : f32 to vector<1x128xf32>
      %121 = arith.subf %120, %105 : vector<1x128xf32>
      %cst_38 = arith.constant 0.000000e+00 : f32
      %122 = vector.broadcast %cst_38 : f32 to vector<1x128xf32>
      %123 = arith.maximumf %121, %122 : vector<1x128xf32>
      %cst_39 = arith.constant 0.000000e+00 : f32
      %124 = vector.broadcast %cst_39 : f32 to vector<1x128xf32>
      %125 = arith.subf %124, %123 : vector<1x128xf32>
      %126 = arith.mulf %125, %9 : vector<1x128xf32>
      %127 = math.exp %126 : vector<1x128xf32>
      %cst_40 = arith.constant 1.000000e+00 : f32
      %128 = vector.broadcast %cst_40 : f32 to vector<1x128xf32>
      %129 = arith.subf %128, %127 : vector<1x128xf32>
      %130 = arith.mulf %119, %129 : vector<1x128xf32>
      %131 = arith.subf %119, %130 : vector<1x128xf32>
      %132 = arith.addf %105, %130 : vector<1x128xf32>
      %133 = arith.mulf %11, %132 : vector<1x128xf32>
      %134 = arith.minimumf %133, %132 : vector<1x128xf32>
      %135 = arith.subf %132, %134 : vector<1x128xf32>
      %136 = arith.addf %112, %134 : vector<1x128xf32>
      %137 = math.exp %136 : vector<1x128xf32>
      %cst_41 = arith.constant 1.000000e+00 : f32
      %138 = vector.broadcast %cst_41 : f32 to vector<1x128xf32>
      %139 = arith.subf %137, %138 : vector<1x128xf32>
      %140 = arith.mulf %3, %139 : vector<1x128xf32>
      %141 = arith.minimumf %140, %136 : vector<1x128xf32>
      %142 = arith.subf %136, %141 : vector<1x128xf32>
      %143 = arith.addf %131, %141 : vector<1x128xf32>
      %cst_42 = arith.constant 1.000000e+03 : f32
      %144 = vector.broadcast %cst_42 : f32 to vector<1x128xf32>
      %145 = arith.mulf %143, %144 : vector<1x128xf32>
      %146 = vector.extract_strided_slice %22 {offsets = [4, 0], sizes = [1, 128], strides = [1, 1]} : vector<8x128xf32> to vector<1x128xf32>
      %147 = vector.extract_strided_slice %25 {offsets = [4, 0], sizes = [1, 128], strides = [1, 1]} : vector<8x128xf32> to vector<1x128xf32>
      %148 = arith.minimumf %146, %147 : vector<1x128xf32>
      %149 = arith.subf %146, %148 : vector<1x128xf32>
      %cst_43 = arith.constant 5.000000e-01 : f32
      %150 = vector.broadcast %cst_43 : f32 to vector<1x128xf32>
      %151 = arith.subf %150, %135 : vector<1x128xf32>
      %cst_44 = arith.constant 0.000000e+00 : f32
      %152 = vector.broadcast %cst_44 : f32 to vector<1x128xf32>
      %153 = arith.maximumf %151, %152 : vector<1x128xf32>
      %cst_45 = arith.constant 0.000000e+00 : f32
      %154 = vector.broadcast %cst_45 : f32 to vector<1x128xf32>
      %155 = arith.subf %154, %153 : vector<1x128xf32>
      %156 = arith.mulf %155, %9 : vector<1x128xf32>
      %157 = math.exp %156 : vector<1x128xf32>
      %cst_46 = arith.constant 1.000000e+00 : f32
      %158 = vector.broadcast %cst_46 : f32 to vector<1x128xf32>
      %159 = arith.subf %158, %157 : vector<1x128xf32>
      %160 = arith.mulf %149, %159 : vector<1x128xf32>
      %161 = arith.subf %149, %160 : vector<1x128xf32>
      %162 = arith.addf %135, %160 : vector<1x128xf32>
      %163 = arith.mulf %11, %162 : vector<1x128xf32>
      %164 = arith.minimumf %163, %162 : vector<1x128xf32>
      %165 = arith.subf %162, %164 : vector<1x128xf32>
      %166 = arith.addf %142, %164 : vector<1x128xf32>
      %167 = math.exp %166 : vector<1x128xf32>
      %cst_47 = arith.constant 1.000000e+00 : f32
      %168 = vector.broadcast %cst_47 : f32 to vector<1x128xf32>
      %169 = arith.subf %167, %168 : vector<1x128xf32>
      %170 = arith.mulf %3, %169 : vector<1x128xf32>
      %171 = arith.minimumf %170, %166 : vector<1x128xf32>
      %172 = arith.subf %166, %171 : vector<1x128xf32>
      %173 = arith.addf %161, %171 : vector<1x128xf32>
      %cst_48 = arith.constant 1.000000e+03 : f32
      %174 = vector.broadcast %cst_48 : f32 to vector<1x128xf32>
      %175 = arith.mulf %173, %174 : vector<1x128xf32>
      %176 = vector.extract_strided_slice %22 {offsets = [5, 0], sizes = [1, 128], strides = [1, 1]} : vector<8x128xf32> to vector<1x128xf32>
      %177 = vector.extract_strided_slice %25 {offsets = [5, 0], sizes = [1, 128], strides = [1, 1]} : vector<8x128xf32> to vector<1x128xf32>
      %178 = arith.minimumf %176, %177 : vector<1x128xf32>
      %179 = arith.subf %176, %178 : vector<1x128xf32>
      %cst_49 = arith.constant 5.000000e-01 : f32
      %180 = vector.broadcast %cst_49 : f32 to vector<1x128xf32>
      %181 = arith.subf %180, %165 : vector<1x128xf32>
      %cst_50 = arith.constant 0.000000e+00 : f32
      %182 = vector.broadcast %cst_50 : f32 to vector<1x128xf32>
      %183 = arith.maximumf %181, %182 : vector<1x128xf32>
      %cst_51 = arith.constant 0.000000e+00 : f32
      %184 = vector.broadcast %cst_51 : f32 to vector<1x128xf32>
      %185 = arith.subf %184, %183 : vector<1x128xf32>
      %186 = arith.mulf %185, %9 : vector<1x128xf32>
      %187 = math.exp %186 : vector<1x128xf32>
      %cst_52 = arith.constant 1.000000e+00 : f32
      %188 = vector.broadcast %cst_52 : f32 to vector<1x128xf32>
      %189 = arith.subf %188, %187 : vector<1x128xf32>
      %190 = arith.mulf %179, %189 : vector<1x128xf32>
      %191 = arith.subf %179, %190 : vector<1x128xf32>
      %192 = arith.addf %165, %190 : vector<1x128xf32>
      %193 = arith.mulf %11, %192 : vector<1x128xf32>
      %194 = arith.minimumf %193, %192 : vector<1x128xf32>
      %195 = arith.subf %192, %194 : vector<1x128xf32>
      %196 = arith.addf %172, %194 : vector<1x128xf32>
      %197 = math.exp %196 : vector<1x128xf32>
      %cst_53 = arith.constant 1.000000e+00 : f32
      %198 = vector.broadcast %cst_53 : f32 to vector<1x128xf32>
      %199 = arith.subf %197, %198 : vector<1x128xf32>
      %200 = arith.mulf %3, %199 : vector<1x128xf32>
      %201 = arith.minimumf %200, %196 : vector<1x128xf32>
      %202 = arith.subf %196, %201 : vector<1x128xf32>
      %203 = arith.addf %191, %201 : vector<1x128xf32>
      %cst_54 = arith.constant 1.000000e+03 : f32
      %204 = vector.broadcast %cst_54 : f32 to vector<1x128xf32>
      %205 = arith.mulf %203, %204 : vector<1x128xf32>
      %206 = vector.extract_strided_slice %22 {offsets = [6, 0], sizes = [1, 128], strides = [1, 1]} : vector<8x128xf32> to vector<1x128xf32>
      %207 = vector.extract_strided_slice %25 {offsets = [6, 0], sizes = [1, 128], strides = [1, 1]} : vector<8x128xf32> to vector<1x128xf32>
      %208 = arith.minimumf %206, %207 : vector<1x128xf32>
      %209 = arith.subf %206, %208 : vector<1x128xf32>
      %cst_55 = arith.constant 5.000000e-01 : f32
      %210 = vector.broadcast %cst_55 : f32 to vector<1x128xf32>
      %211 = arith.subf %210, %195 : vector<1x128xf32>
      %cst_56 = arith.constant 0.000000e+00 : f32
      %212 = vector.broadcast %cst_56 : f32 to vector<1x128xf32>
      %213 = arith.maximumf %211, %212 : vector<1x128xf32>
      %cst_57 = arith.constant 0.000000e+00 : f32
      %214 = vector.broadcast %cst_57 : f32 to vector<1x128xf32>
      %215 = arith.subf %214, %213 : vector<1x128xf32>
      %216 = arith.mulf %215, %9 : vector<1x128xf32>
      %217 = math.exp %216 : vector<1x128xf32>
      %cst_58 = arith.constant 1.000000e+00 : f32
      %218 = vector.broadcast %cst_58 : f32 to vector<1x128xf32>
      %219 = arith.subf %218, %217 : vector<1x128xf32>
      %220 = arith.mulf %209, %219 : vector<1x128xf32>
      %221 = arith.subf %209, %220 : vector<1x128xf32>
      %222 = arith.addf %195, %220 : vector<1x128xf32>
      %223 = arith.mulf %11, %222 : vector<1x128xf32>
      %224 = arith.minimumf %223, %222 : vector<1x128xf32>
      %225 = arith.subf %222, %224 : vector<1x128xf32>
      %226 = arith.addf %202, %224 : vector<1x128xf32>
      %227 = math.exp %226 : vector<1x128xf32>
      %cst_59 = arith.constant 1.000000e+00 : f32
      %228 = vector.broadcast %cst_59 : f32 to vector<1x128xf32>
      %229 = arith.subf %227, %228 : vector<1x128xf32>
      %230 = arith.mulf %3, %229 : vector<1x128xf32>
      %231 = arith.minimumf %230, %226 : vector<1x128xf32>
      %232 = arith.subf %226, %231 : vector<1x128xf32>
      %233 = arith.addf %221, %231 : vector<1x128xf32>
      %cst_60 = arith.constant 1.000000e+03 : f32
      %234 = vector.broadcast %cst_60 : f32 to vector<1x128xf32>
      %235 = arith.mulf %233, %234 : vector<1x128xf32>
      %236 = vector.extract_strided_slice %22 {offsets = [7, 0], sizes = [1, 128], strides = [1, 1]} : vector<8x128xf32> to vector<1x128xf32>
      %237 = vector.extract_strided_slice %25 {offsets = [7, 0], sizes = [1, 128], strides = [1, 1]} : vector<8x128xf32> to vector<1x128xf32>
      %238 = arith.minimumf %236, %237 : vector<1x128xf32>
      %239 = arith.subf %236, %238 : vector<1x128xf32>
      %cst_61 = arith.constant 5.000000e-01 : f32
      %240 = vector.broadcast %cst_61 : f32 to vector<1x128xf32>
      %241 = arith.subf %240, %225 : vector<1x128xf32>
      %cst_62 = arith.constant 0.000000e+00 : f32
      %242 = vector.broadcast %cst_62 : f32 to vector<1x128xf32>
      %243 = arith.maximumf %241, %242 : vector<1x128xf32>
      %cst_63 = arith.constant 0.000000e+00 : f32
      %244 = vector.broadcast %cst_63 : f32 to vector<1x128xf32>
      %245 = arith.subf %244, %243 : vector<1x128xf32>
      %246 = arith.mulf %245, %9 : vector<1x128xf32>
      %247 = math.exp %246 : vector<1x128xf32>
      %cst_64 = arith.constant 1.000000e+00 : f32
      %248 = vector.broadcast %cst_64 : f32 to vector<1x128xf32>
      %249 = arith.subf %248, %247 : vector<1x128xf32>
      %250 = arith.mulf %239, %249 : vector<1x128xf32>
      %251 = arith.subf %239, %250 : vector<1x128xf32>
      %252 = arith.addf %225, %250 : vector<1x128xf32>
      %253 = arith.mulf %11, %252 : vector<1x128xf32>
      %254 = arith.minimumf %253, %252 : vector<1x128xf32>
      %255 = arith.subf %252, %254 : vector<1x128xf32>
      %256 = arith.addf %232, %254 : vector<1x128xf32>
      %257 = math.exp %256 : vector<1x128xf32>
      %cst_65 = arith.constant 1.000000e+00 : f32
      %258 = vector.broadcast %cst_65 : f32 to vector<1x128xf32>
      %259 = arith.subf %257, %258 : vector<1x128xf32>
      %260 = arith.mulf %3, %259 : vector<1x128xf32>
      %261 = arith.minimumf %260, %256 : vector<1x128xf32>
      %262 = arith.subf %256, %261 : vector<1x128xf32>
      %263 = arith.addf %251, %261 : vector<1x128xf32>
      %cst_66 = arith.constant 1.000000e+03 : f32
      %264 = vector.broadcast %cst_66 : f32 to vector<1x128xf32>
      %265 = arith.mulf %263, %264 : vector<1x128xf32>
      %266 = tpu.concatenate %55, %85, %115, %145, %175, %205, %235, %265 in 0 : vector<1x128xf32>, vector<1x128xf32>, vector<1x128xf32>, vector<1x128xf32>, vector<1x128xf32>, vector<1x128xf32>, vector<1x128xf32>, vector<1x128xf32> -> vector<8x128xf32>
      %267 = arith.index_cast %19 : i32 to index
      %c0_67 = arith.constant 0 : index
      %268 = vector.load %arg5[%267, %c0_67] : memref<16x128xf32, #tpu.memory_space<vmem>>, vector<8x128xf32>
      tpu.vector_store %arg5[%267, %c0_67], %266 {strides = array<i32>} : memref<16x128xf32, #tpu.memory_space<vmem>>, vector<8x128xf32>,
      scf.yield %255, %262 : vector<1x128xf32>, vector<1x128xf32>
    }
    %c2_i32_11 = arith.constant 2 : i32
    %c0_12 = arith.constant 0 : index
    %c0_13 = arith.constant 0 : index
    %16 = vector.load %arg6[%c0_12, %c0_13] : memref<1x128xf32, #tpu.memory_space<vmem>>, vector<1x128xf32>
    tpu.vector_store %arg6[%c0_12, %c0_13], %15#0 {strides = array<i32>} : memref<1x128xf32, #tpu.memory_space<vmem>>, vector<1x128xf32>,
    %c0_14 = arith.constant 0 : index
    %c0_15 = arith.constant 0 : index
    %17 = vector.load %arg7[%c0_14, %c0_15] : memref<1x128xf32, #tpu.memory_space<vmem>>, vector<1x128xf32>
    tpu.vector_store %arg7[%c0_14, %c0_15], %15#1 {strides = array<i32>} : memref<1x128xf32, #tpu.memory_space<vmem>>, vector<1x128xf32>,
    return
  }
  func.func @transform_0(%arg0: i32, %arg1: i32) -> (i32, i32) {
    %c0_i32 = arith.constant 0 : i32
    %c0_i32_0 = arith.constant 0 : i32
    return %c0_i32, %arg0 : i32, i32
  }
  func.func @transform_1(%arg0: i32, %arg1: i32) -> (i32, i32) {
    %c0_i32 = arith.constant 0 : i32
    %c0_i32_0 = arith.constant 0 : i32
    return %c0_i32, %arg0 : i32, i32
  }
  func.func @transform_2(%arg0: i32, %arg1: i32) -> (i32, i32, i32) {
    %c0_i32 = arith.constant 0 : i32
    %c0_i32_0 = arith.constant 0 : i32
    return %c0_i32, %arg1, %arg0 : i32, i32, i32
  }
  func.func @transform_3(%arg0: i32, %arg1: i32) -> (i32, i32) {
    %c0_i32 = arith.constant 0 : i32
    return %arg1, %arg0 : i32, i32
  }
}

</mosaic_0001>

<bundles_post_ra>
// kernel: synthetic_cfe_forward.1
= control target key start
LH: loop header
LB: loop body
LE: loop exit
PB: predicated region body
PF: predicated region fallthrough
CT: control target
= control target key end

     0   :  { %v430_v0 = vmov 0.0   ;;  %v431_v3 = vmov 0.05   ;;  %s536_s0 = inlined_call_operand.vmem [shape: f32[1,128], index: 0, kind: input, shape index: {}]   ;;  %s537_s1 = inlined_call_operand.vmem [shape: f32[1,128], index: 1, kind: input, shape index: {}]   ;;  %s538_s2 = inlined_call_operand.vmem [shape: f32[2,16,128], index: 2, kind: input, shape index: {}]   ;;  %s539_s3 = inlined_call_operand.vmem [shape: f32[16,128], index: 3, kind: output, shape index: {}]  }
   0x1   :  { %18 = vst [vmem:[#allocation2] sm:$0x1] %v430_v0  ;;  %v455_v1 = vld [vmem:[%s536_s0] sm:$0x1]  ;;  %s469_s0 = smov 0  }
   0x2   :  { %v460_v2 = vld [vmem:[%s537_s1] sm:$0x1]  ;;  %19 = vst [vmem:[#allocation3] sm:$0x1] %v431_v3 }
   0x3   :  { %v22_v4 = vadd.f32 1e-08, %v460_v2 }
   0x5   :  { %372 = vrcp.f32 %v22_v4 }
   0x8   :  { %v24_v5 = vld [vmem:[#allocation2] sm:$0x1]  }
   0x9   :  { %v25_v6 = vld [vmem:[#allocation3] sm:$0x1]  }
   0xb   :  { %v463_v7 = vpop.eup %372 }
   0xc LB: > { %v42_v8 = vsub.f32 0.5, %v424_v5  ;;  %s335_s1 = sshll.u32 %s428_s0, 3  ;;  %vm295_vm0 = vcmask 1040384   ;;  %vm297_vm1 = vcmask 1041408   ;;  %vm299_vm2 = vcmask 1042432   ;;  %s31_s0 = sadd.s32 1, %s428_s0   ;;  %s428_s0 = sphi %s469_s0, %s31_s0   ;;  %v424_v5 = vphi %v24_v5, %v541_v5   ;;  %v420_v6 = vphi %v25_v6, %v540_v6  }
   0xd   : > { %s35_s18 = scalar_lea.vmem %s538_s2, %s335_s1  ;;  %vm301_vm3 = vcmask 1043456   ;;  %vm303_vm4 = vcmask 1044480   ;;  %vm305_vm5 = vcmask 1045504   ;;  %vm307_vm6 = vcmask 1046528   ;;  %s309_s21 = scalar_lea.vmem %s539_s3, %s335_s1 }
   0xe   : > { %v43_v9 = vmax.f32 %v42_v8, 0.0  ;;  %v36_v12 = vld [vmem:[%s35_s18] sm:$0xff]  ;;  %v337_v13 = vld [vmem:[%s35_s18 + $0x10] sm:$0xff]  ;;  %p28_p0 = scmp.ge.s32.totalorder %s31_s0, 2  }
   0xf   : > { %v40_v15 = vmin.f32 %v36_v12, %v337_v13 }
  0x10   : > { %v44_v10 = vsub.f32 0.0, %v43_v9 }
  0x11   : > { %v483_v16 = vsub.f32 %v36_v12, %v40_v15 }
  0x12   : > { %v45_v11 = vmul.f32 %v463_v7, %v44_v10 }
  0x14   : > { %v46_v14 = vmul.f32 1.442695, %v45_v11 }
  0x16   : > { %374 = vpow2.f32 %v46_v14 }
  0x1c   : > { %v375_v17 = vpop.eup %374 }
  0x1d   : > { %v48_v18 = vsub.f32 1.0, %v375_v17 }
  0x1f   : > { %v49_v19 = vmul.f32 %v48_v18, %v483_v16 }
  0x21   : > { %v51_v20 = vadd.f32 %v424_v5, %v49_v19  ;;  %v50_v33 = vsub.f32 %v483_v16, %v49_v19 }
  0x23   : > { %v52_v21 = vmul.f32 %v51_v20, %v460_v2 }
  0x25   : > { %v53_v22 = vmin.f32 %v52_v21, %v51_v20 }
  0x27   : > { %v54_v23 = vsub.f32 %v51_v20, %v53_v22  ;;  %v55_v24 = vadd.f32 %v420_v6, %v53_v22 }
  0x29   : > { %v56_v25 = vmul.f32 1.442695, %v55_v24  ;;  %v64_v26 = vsub.f32 0.5, %v54_v23 }
  0x2b   : > { %376 = vpow2.f32 %v56_v25  ;;  %v65_v27 = vmax.f32 %v64_v26, 0.0 }
  0x2d   : > { %v66_v28 = vsub.f32 0.0, %v65_v27 }
  0x2f   : > { %v67_v29 = vmul.f32 %v463_v7, %v66_v28 }
  0x31   : > { %v377_v30 = vpop.eup %376  ;;  %v68_v31 = vmul.f32 1.442695, %v67_v29 }
  0x32   : > { %v338_v32 = vadd.f32 -1.0, %v377_v30 }
  0x33   : > { %378 = vpow2.f32 %v68_v31 }
  0x34   : > { %v59_v34 = vmul.f32 %v338_v32, %v455_v1 }
  0x36   : > { %v60_v35 = vmin.f32 %v59_v34, %v55_v24 }
  0x38   : > { %v62_v36 = vadd.f32 %v60_v35, %v50_v33  ;;  %v61_v43 = vsub.f32 %v55_v24, %v60_v35 }
  0x39   : > { %v379_v37 = vpop.eup %378 }
  0x3a   : > { %v70_v38 = vsub.f32 1.0, %v379_v37  ;;  %v63_v61 = vmul.f32 1000.0, %v62_v36 }
  0x3c   : > { %v72_v39 = vperm.slane %v70_v38, 0 }
  0x3e   : > { %v74_v40 = vmul.f32 %v72_v39, %v483_v16 }
  0x40   : > { %77 = vst [vmem:[#allocation1] sm:$0xff] %v74_v40  ;;  %v75_v57 = vsub.f32 %v483_v16, %v74_v40 }
  0x47   : > { %v79_v41 = vld [vmem:[#allocation1 + $0x1] ss:$9 sm:$0xff] }
  0x48   : > { %v81_v42 = vadd.f32 %v79_v41, %v54_v23 }
  0x4a   : > { %v82_v44 = vmul.f32 %v81_v42, %v460_v2 }
  0x4c   : > { %v83_v45 = vmin.f32 %v82_v44, %v81_v42 }
  0x4e   : > { %v85_v46 = vadd.f32 %v83_v45, %v61_v43  ;;  %v84_v47 = vsub.f32 %v81_v42, %v83_v45 }
  0x50   : > { %v86_v48 = vmul.f32 1.442695, %v85_v46  ;;  %v97_v49 = vsub.f32 0.5, %v84_v47 }
  0x52   : > { %380 = vpow2.f32 %v86_v48  ;;  %v98_v50 = vmax.f32 %v97_v49, 0.0 }
  0x54   : > { %v99_v51 = vsub.f32 0.0, %v98_v50 }
  0x56   : > { %v100_v52 = vmul.f32 %v463_v7, %v99_v51 }
  0x58   : > { %v381_v53 = vpop.eup %380  ;;  %v101_v54 = vmul.f32 1.442695, %v100_v52 }
  0x59   : > { %v339_v55 = vadd.f32 -1.0, %v381_v53 }
  0x5a   : > { %382 = vpow2.f32 %v101_v54 }
  0x5b   : > { %v89_v56 = vmul.f32 %v339_v55, %v455_v1 }
  0x5d   : > { %v90_v58 = vmin.f32 %v89_v56, %v85_v46 }
  0x5f   : > { %v93_v59 = vperm.slane %v90_v58, 0  ;;  %v91_v10 = vsub.f32 %v85_v46, %v90_v58 }
  0x60   : > { %v383_v60 = vpop.eup %382 }
  0x61   : > { %v95_v62 = vadd.f32 %v93_v59, %v75_v57  ;;  %v103_v63 = vsub.f32 1.0, %v383_v60 }
  0x63   : > { %v96_v0 = vmul.f32 1000.0, %v95_v62  ;;  %v105_v3 = vperm.slane %v103_v63, 0 }
  0x65   : > { %v296_v4 = vsel %vm295_vm0, %v63_v61, %v96_v0  ;;  %v107_v5 = vmul.f32 %v105_v3, %v483_v16 }
  0x67   : > { %110 = vst [vmem:[#allocation1] sm:$0xff] %v107_v5  ;;  %v108_v25 = vsub.f32 %v483_v16, %v107_v5 }
  0x6e   : > { %v112_v6 = vld [vmem:[#allocation1 + $0x2] ss:$9 sm:$0xff] }
  0x6f   : > { %v114_v8 = vadd.f32 %v112_v6, %v84_v47 }
  0x71   : > { %v115_v9 = vmul.f32 %v114_v8, %v460_v2 }
  0x73   : > { %v116_v11 = vmin.f32 %v115_v9, %v114_v8 }
  0x75   : > { %v118_v12 = vadd.f32 %v116_v11, %v91_v10  ;;  %v117_v13 = vsub.f32 %v114_v8, %v116_v11 }
  0x77   : > { %v119_v14 = vmul.f32 1.442695, %v118_v12  ;;  %v130_v15 = vsub.f32 0.5, %v117_v13 }
  0x79   : > { %384 = vpow2.f32 %v119_v14  ;;  %v131_v17 = vmax.f32 %v130_v15, 0.0 }
  0x7b   : > { %v132_v18 = vsub.f32 0.0, %v131_v17 }
  0x7d   : > { %v133_v19 = vmul.f32 %v463_v7, %v132_v18 }
  0x7f   : > { %v385_v20 = vpop.eup %384  ;;  %v134_v21 = vmul.f32 1.442695, %v133_v19 }
  0x80   : > { %v340_v22 = vadd.f32 -1.0, %v385_v20 }
  0x81   : > { %386 = vpow2.f32 %v134_v21 }
  0x82   : > { %v122_v23 = vmul.f32 %v340_v22, %v455_v1 }
  0x84   : > { %v123_v24 = vmin.f32 %v122_v23, %v118_v12 }
  0x86   : > { %v126_v26 = vperm.slane %v123_v24, 0  ;;  %v124_v37 = vsub.f32 %v118_v12, %v123_v24 }
  0x87   : > { %v387_v27 = vpop.eup %386 }
  0x88   : > { %v128_v28 = vadd.f32 %v126_v26, %v108_v25  ;;  %v136_v29 = vsub.f32 1.0, %v387_v27 }
  0x8a   : > { %v129_v30 = vmul.f32 1000.0, %v128_v28  ;;  %v138_v31 = vperm.slane %v136_v29, 0 }
  0x8c   : > { %v140_v32 = vmul.f32 %v138_v31, %v483_v16  ;;  %v298_v33 = vsel %vm297_vm1, %v296_v4, %v129_v30 }
  0x8e   : > { %143 = vst [vmem:[#allocation1] sm:$0xff] %v140_v32  ;;  %v141_v51 = vsub.f32 %v483_v16, %v140_v32 }
  0x95   : > { %v145_v34 = vld [vmem:[#allocation1 + $0x3] ss:$9 sm:$0xff] }
  0x96   : > { %v147_v35 = vadd.f32 %v145_v34, %v117_v13 }
  0x98   : > { %v148_v36 = vmul.f32 %v147_v35, %v460_v2 }
  0x9a   : > { %v149_v38 = vmin.f32 %v148_v36, %v147_v35 }
  0x9c   : > { %v150_v39 = vsub.f32 %v147_v35, %v149_v38  ;;  %v151_v40 = vadd.f32 %v149_v38, %v124_v37 }
  0x9e   : > { %v152_v41 = vmul.f32 1.442695, %v151_v40  ;;  %v163_v42 = vsub.f32 0.5, %v150_v39 }
  0xa0   : > { %v164_v43 = vmax.f32 %v163_v42, 0.0  ;;  %388 = vpow2.f32 %v152_v41 }
  0xa2   : > { %v165_v44 = vsub.f32 0.0, %v164_v43 }
  0xa4   : > { %v166_v45 = vmul.f32 %v463_v7, %v165_v44 }
  0xa6   : > { %v389_v46 = vpop.eup %388  ;;  %v167_v47 = vmul.f32 1.442695, %v166_v45 }
  0xa7   : > { %v341_v48 = vadd.f32 -1.0, %v389_v46 }
  0xa8   : > { %390 = vpow2.f32 %v167_v47 }
  0xa9   : > { %v155_v49 = vmul.f32 %v341_v48, %v455_v1 }
  0xab   : > { %v156_v50 = vmin.f32 %v155_v49, %v151_v40 }
  0xad   : > { %v159_v52 = vperm.slane %v156_v50, 0  ;;  %v157_v0 = vsub.f32 %v151_v40, %v156_v50 }
  0xae   : > { %v391_v53 = vpop.eup %390 }
  0xaf   : > { %v169_v54 = vsub.f32 1.0, %v391_v53  ;;  %v161_v55 = vadd.f32 %v159_v52, %v141_v51 }
  0xb1   : > { %v171_v56 = vperm.slane %v169_v54, 0  ;;  %v162_v57 = vmul.f32 1000.0, %v161_v55 }
  0xb3   : > { %v173_v58 = vmul.f32 %v171_v56, %v483_v16  ;;  %v300_v59 = vsel %vm299_vm2, %v298_v33, %v162_v57 }
  0xb5   : > { %176 = vst [vmem:[#allocation1] sm:$0xff] %v173_v58  ;;  %v174_v17 = vsub.f32 %v483_v16, %v173_v58 }
  0xbc   : > { %v178_v60 = vld [vmem:[#allocation1 + $0x4] ss:$9 sm:$0xff] }
  0xbd   : > { %v180_v61 = vadd.f32 %v178_v60, %v150_v39 }
  0xbf   : > { %v181_v62 = vmul.f32 %v180_v61, %v460_v2 }
  0xc1   : > { %v182_v63 = vmin.f32 %v181_v62, %v180_v61 }
  0xc3   : > { %v183_v3 = vsub.f32 %v180_v61, %v182_v63  ;;  %v184_v4 = vadd.f32 %v182_v63, %v157_v0 }
  0xc5   : > { %v196_v5 = vsub.f32 0.5, %v183_v3  ;;  %v185_v6 = vmul.f32 1.442695, %v184_v4 }
  0xc7   : > { %v197_v8 = vmax.f32 %v196_v5, 0.0  ;;  %392 = vpow2.f32 %v185_v6 }
  0xc9   : > { %v198_v9 = vsub.f32 0.0, %v197_v8 }
  0xcb   : > { %v199_v10 = vmul.f32 %v463_v7, %v198_v9 }
  0xcd   : > { %v393_v11 = vpop.eup %392  ;;  %v200_v12 = vmul.f32 1.442695, %v199_v10 }
  0xce   : > { %v342_v13 = vadd.f32 -1.0, %v393_v11 }
  0xcf   : > { %394 = vpow2.f32 %v200_v12 }
  0xd0   : > { %v188_v14 = vmul.f32 %v342_v13, %v455_v1 }
  0xd2   : > { %v189_v15 = vmin.f32 %v188_v14, %v184_v4 }
  0xd4   : > { %v192_v18 = vperm.slane %v189_v15, 0  ;;  %v190_v30 = vsub.f32 %v184_v4, %v189_v15 }
  0xd5   : > { %v395_v19 = vpop.eup %394 }
  0xd6   : > { %v202_v20 = vsub.f32 1.0, %v395_v19  ;;  %v194_v21 = vadd.f32 %v192_v18, %v174_v17 }
  0xd8   : > { %v204_v22 = vperm.slane %v202_v20, 0  ;;  %v195_v23 = vmul.f32 1000.0, %v194_v21 }
  0xda   : > { %v206_v24 = vmul.f32 %v204_v22, %v483_v16  ;;  %v302_v25 = vsel %vm301_vm3, %v300_v59, %v195_v23 }
  0xdc   : > { %209 = vst [vmem:[#allocation1] sm:$0xff] %v206_v24  ;;  %v207_v43 = vsub.f32 %v483_v16, %v206_v24 }
  0xe3   : > { %v211_v26 = vld [vmem:[#allocation1 + $0x5] ss:$9 sm:$0xff] }
  0xe4   : > { %v213_v27 = vadd.f32 %v211_v26, %v183_v3 }
  0xe6   : > { %v214_v28 = vmul.f32 %v213_v27, %v460_v2 }
  0xe8   : > { %v215_v29 = vmin.f32 %v214_v28, %v213_v27 }
  0xea   : > { %v216_v31 = vsub.f32 %v213_v27, %v215_v29  ;;  %v217_v32 = vadd.f32 %v215_v29, %v190_v30 }
  0xec   : > { %v229_v33 = vsub.f32 0.5, %v216_v31  ;;  %v218_v34 = vmul.f32 1.442695, %v217_v32 }
  0xee   : > { %v230_v35 = vmax.f32 %v229_v33, 0.0  ;;  %396 = vpow2.f32 %v218_v34 }
  0xf0   : > { %v231_v36 = vsub.f32 0.0, %v230_v35 }
  0xf2   : > { %v232_v37 = vmul.f32 %v463_v7, %v231_v36 }
  0xf4   : > { %v397_v38 = vpop.eup %396  ;;  %v233_v39 = vmul.f32 1.442695, %v232_v37 }
  0xf5   : > { %v343_v40 = vadd.f32 -1.0, %v397_v38 }
  0xf6   : > { %398 = vpow2.f32 %v233_v39 }
  0xf7   : > { %v221_v41 = vmul.f32 %v343_v40, %v455_v1 }
  0xf9   : > { %v222_v42 = vmin.f32 %v221_v41, %v217_v32 }
  0xfb   : > { %v225_v44 = vperm.slane %v222_v42, 0  ;;  %v223_v56 = vsub.f32 %v217_v32, %v222_v42 }
  0xfc   : > { %v399_v45 = vpop.eup %398 }
  0xfd   : > { %v235_v46 = vsub.f32 1.0, %v399_v45  ;;  %v227_v47 = vadd.f32 %v225_v44, %v207_v43 }
  0xff   : > { %v237_v48 = vperm.slane %v235_v46, 0  ;;  %v228_v49 = vmul.f32 1000.0, %v227_v47 }
 0x101   : > { %v239_v50 = vmul.f32 %v237_v48, %v483_v16  ;;  %v304_v51 = vsel %vm303_vm4, %v302_v25, %v228_v49 }
 0x103   : > { %242 = vst [vmem:[#allocation1] sm:$0xff] %v239_v50  ;;  %v240_v8 = vsub.f32 %v483_v16, %v239_v50 }
 0x10a   : > { %v244_v52 = vld [vmem:[#allocation1 + $0x6] ss:$9 sm:$0xff] }
 0x10b   : > { %v246_v53 = vadd.f32 %v244_v52, %v216_v31 }
 0x10d   : > { %v247_v54 = vmul.f32 %v246_v53, %v460_v2 }
 0x10f   : > { %v248_v55 = vmin.f32 %v247_v54, %v246_v53 }
 0x111   : > { %v249_v57 = vsub.f32 %v246_v53, %v248_v55  ;;  %v250_v58 = vadd.f32 %v248_v55, %v223_v56 }
 0x113   : > { %v262_v59 = vsub.f32 0.5, %v249_v57  ;;  %v251_v60 = vmul.f32 1.442695, %v250_v58 }
 0x115   : > { %v263_v61 = vmax.f32 %v262_v59, 0.0  ;;  %400 = vpow2.f32 %v251_v60 }
 0x117   : > { %v264_v62 = vsub.f32 0.0, %v263_v61 }
 0x119   : > { %v265_v63 = vmul.f32 %v463_v7, %v264_v62 }
 0x11b   : > { %v401_v0 = vpop.eup %400  ;;  %v266_v3 = vmul.f32 1.442695, %v265_v63 }
 0x11c   : > { %v344_v4 = vadd.f32 -1.0, %v401_v0 }
 0x11d   : > { %402 = vpow2.f32 %v266_v3 }
 0x11e   : > { %v254_v5 = vmul.f32 %v344_v4, %v455_v1 }
 0x120   : > { %v255_v6 = vmin.f32 %v254_v5, %v250_v58 }
 0x122   : > { %v258_v9 = vperm.slane %v255_v6, 0  ;;  %v256_v21 = vsub.f32 %v250_v58, %v255_v6 }
 0x123   : > { %v403_v10 = vpop.eup %402 }
 0x124   : > { %v268_v11 = vsub.f32 1.0, %v403_v10  ;;  %v260_v12 = vadd.f32 %v258_v9, %v240_v8 }
 0x126   : > { %v270_v13 = vperm.slane %v268_v11, 0  ;;  %v261_v14 = vmul.f32 1000.0, %v260_v12 }
 0x128   : > { %v272_v15 = vmul.f32 %v270_v13, %v483_v16  ;;  %v306_v17 = vsel %vm305_vm5, %v304_v51, %v261_v14 }
 0x12a   : > { %275 = vst [vmem:[#allocation1] sm:$0xff] %v272_v15  ;;  %v273_v30 = vsub.f32 %v483_v16, %v272_v15 }
 0x131   : > { %v277_v18 = vld [vmem:[#allocation1 + $0x7] ss:$9 sm:$0xff] }
 0x132   : > { %v279_v19 = vadd.f32 %v277_v18, %v249_v57 }
 0x134   : > { %v280_v20 = vmul.f32 %v279_v19, %v460_v2 }
 0x136   : > { %v281_v22 = vmin.f32 %v280_v20, %v279_v19 }
 0x138   : > { %v282_v23 = vsub.f32 %v279_v19, %v281_v22   ;;  %v283_v24 = vadd.f32 %v281_v22, %v256_v21 }
 0x13a   : > { %v284_v25 = vmul.f32 1.442695, %v283_v24  ;;  %v541_v5 = vmov %v282_v23  ;;  %311 = vst [vmem:[#allocation2] sm:$0x1] (%p28_p0), %v282_v23 }
 0x13c   : > { %404 = vpow2.f32 %v284_v25 }
 0x142   : > { %v405_v26 = vpop.eup %404 }
 0x143   : > { %v345_v27 = vadd.f32 -1.0, %v405_v26 }
 0x145   : > { %v287_v28 = vmul.f32 %v345_v27, %v455_v1 }
 0x147   : > { %v288_v29 = vmin.f32 %v287_v28, %v283_v24 }
 0x149   : > { %v289_v31 = vsub.f32 %v283_v24, %v288_v29   ;;  %v291_v32 = vperm.slane %v288_v29, 0 }
 0x14b   : > { %v293_v33 = vadd.f32 %v291_v32, %v273_v30  ;;  %v540_v6 = vmov %v289_v31  ;;  %312 = vst [vmem:[#allocation3] sm:$0x1] (%p28_p0), %v289_v31 }
 0x14c   :  { %30 = sbr.rel (!%p28_p0) target bundleno = 12 (0xc), region = 53 }
 0x14d   : > { %v294_v34 = vmul.f32 1000.0, %v293_v33 }
 0x14f   : > { %v308_v35 = vsel %vm307_vm6, %v306_v17, %v294_v34 }
 0x150   : > { %310 = vst [vmem:[%s309_s21] sm:$0xff] %v308_v35 }

</bundles_post_ra>
